<compile_context>
chip_gen: v7x
topology: tpu7x:2x2x1
jax: 0.10.0
libtpu: 0.0.40
codegen_flags: <defaults>
</compile_context>

<pallas_src>
import functools
import math

import jax
import jax.numpy as jnp
from jax.experimental import pallas as pl
from jax.experimental.pallas import tpu as pltpu


# ------------------------------ tiling helpers ------------------------------

def _row_tile(m):
    """Largest MXU-friendly row tile that divides m exactly (no padding)."""
    for t in (512, 256, 128, 64, 32, 16, 8):
        if m % t == 0:
            return t
    return m  # ragged small case: single full block


def _col_tile(n):
    """Lane-dense column tile (multiple of 128) dividing n, else full n."""
    for t in (512, 256, 128):
        if n % t == 0:
            return t
    return n


# ----------------------------- Pallas kernels ------------------------------

def _linear_kernel(x_ref, w_ref, b_ref, o_ref, *, act):
    # MXU matmul in input dtype, f32 accumulation; bias/act epilogue in f32.
    y = jnp.dot(x_ref[...], w_ref[...], preferred_element_type=jnp.float32)
    y = y + b_ref[...].astype(jnp.float32)
    if act == "gelu":
        # TODO(synk): BERT uses exact erf-GELU; tanh approximation kept for Mosaic-safe lowering.
        c = math.sqrt(2.0 / math.pi)
        y = 0.5 * y * (1.0 + jnp.tanh(c * (y + 0.044715 * y * y * y)))
    o_ref[...] = y.astype(o_ref.dtype)


def pallas_linear(x2d, w, b, act=None):
    """y = act(x @ w + b) for 2-D x, tiled over rows and (lane-dense) columns."""
    M, K = x2d.shape
    N = w.shape[1]
    tm, tn = _row_tile(M), _col_tile(N)
    return pl.pallas_call(
        functools.partial(_linear_kernel, act=act),
        out_shape=jax.ShapeDtypeStruct((M, N), x2d.dtype),
        grid=(M // tm, N // tn),
        in_specs=[
            pl.BlockSpec((tm, K), lambda i, j: (i, 0)),
            pl.BlockSpec((K, tn), lambda i, j: (0, j)),
            pl.BlockSpec((1, tn), lambda i, j: (0, j)),
        ],
        out_specs=pl.BlockSpec((tm, tn), lambda i, j: (i, j)),
        compiler_params=pltpu.CompilerParams(
            dimension_semantics=("parallel", "parallel")),
    )(x2d, w, b.reshape(1, N))


def _linear_res_ln_kernel(x_ref, w_ref, b_ref, res_ref, g_ref, bb_ref, o_ref, *, eps):
    # Fused: LayerNorm(x @ w + b + residual) * gamma + beta
    y = jnp.dot(x_ref[...], w_ref[...], preferred_element_type=jnp.float32)
    y = y + b_ref[...].astype(jnp.float32) + res_ref[...].astype(jnp.float32)
    mean = jnp.mean(y, axis=-1, keepdims=True)
    var = jnp.mean(jnp.square(y - mean), axis=-1, keepdims=True)
    yn = (y - mean) * jax.lax.rsqrt(var + eps)
    o_ref[...] = (yn * g_ref[...].astype(jnp.float32)
                  + bb_ref[...].astype(jnp.float32)).astype(o_ref.dtype)


def pallas_linear_res_ln(x2d, w, b, res2d, gamma, beta, eps=1e-12):
    """Fused projection + residual add + LayerNorm (full-N so the LN row reduction stays in-tile)."""
    M, K = x2d.shape
    N = w.shape[1]
    tm = _row_tile(M)
    return pl.pallas_call(
        functools.partial(_linear_res_ln_kernel, eps=eps),
        out_shape=jax.ShapeDtypeStruct((M, N), x2d.dtype),
        grid=(M // tm,),
        in_specs=[
            pl.BlockSpec((tm, K), lambda i: (i, 0)),
            pl.BlockSpec((K, N), lambda i: (0, 0)),
            pl.BlockSpec((1, N), lambda i: (0, 0)),
            pl.BlockSpec((tm, N), lambda i: (i, 0)),
            pl.BlockSpec((1, N), lambda i: (0, 0)),
            pl.BlockSpec((1, N), lambda i: (0, 0)),
        ],
        out_specs=pl.BlockSpec((tm, N), lambda i: (i, 0)),
        compiler_params=pltpu.CompilerParams(dimension_semantics=("parallel",)),
    )(x2d, w, b.reshape(1, N), res2d, gamma.reshape(1, N), beta.reshape(1, N))


def _layernorm_kernel(x_ref, g_ref, b_ref, o_ref, *, eps):
    x = x_ref[...].astype(jnp.float32)
    mean = jnp.mean(x, axis=-1, keepdims=True)
    var = jnp.mean(jnp.square(x - mean), axis=-1, keepdims=True)
    y = (x - mean) * jax.lax.rsqrt(var + eps)
    o_ref[...] = (y * g_ref[...].astype(jnp.float32)
                  + b_ref[...].astype(jnp.float32)).astype(o_ref.dtype)


def pallas_layernorm(x2d, gamma, beta, eps=1e-12):
    M, D = x2d.shape
    tm = _row_tile(M)
    return pl.pallas_call(
        functools.partial(_layernorm_kernel, eps=eps),
        out_shape=jax.ShapeDtypeStruct((M, D), x2d.dtype),
        grid=(M // tm,),
        in_specs=[
            pl.BlockSpec((tm, D), lambda i: (i, 0)),
            pl.BlockSpec((1, D), lambda i: (0, 0)),
            pl.BlockSpec((1, D), lambda i: (0, 0)),
        ],
        out_specs=pl.BlockSpec((tm, D), lambda i: (i, 0)),
        compiler_params=pltpu.CompilerParams(dimension_semantics=("parallel",)),
    )(x2d, gamma.reshape(1, D), beta.reshape(1, D))


def _attention_kernel(q_ref, k_ref, v_ref, m_ref, o_ref, *, scale):
    # All heads of one batch element per grid step. Batched einsum feeds the MXU
    # directly (no k.T / XLU transpose of the key tile).
    q = q_ref[...] * scale                                   # (H, S, Dh)
    s = jnp.einsum("hqd,hkd->hqk", q, k_ref[...],
                   preferred_element_type=jnp.float32)        # (H, S, S)
    s = s + m_ref[...]                                        # additive mask (1, S) broadcast
    m = jnp.max(s, axis=-1, keepdims=True)
    p = jnp.exp(s - m)
    l = jnp.sum(p, axis=-1, keepdims=True)
    ctx = jnp.einsum("hqk,hkd->hqd", p.astype(v_ref.dtype), v_ref[...],
                     preferred_element_type=jnp.float32)      # (H, S, Dh)
    # Normalize once on the (S, Dh) context with an EUP reciprocal (free slot).
    o_ref[...] = (ctx * pl.reciprocal(l, approx=True)).astype(o_ref.dtype)


def pallas_attention(q, k, v, addmask):
    """q,k,v: [B,H,S,Dh]; addmask: [B,1,S] additive mask (f32). Grid over batch."""
    # TODO(synk): for long sequences (real BERT S=512) convert to a flash-style
    # kernel with a KV grid axis + online softmax to keep VMEM flat (v7x 64 MiB).
    B, H, S, Dh = q.shape
    scale = 1.0 / math.sqrt(Dh)
    qkv_spec = pl.BlockSpec((None, H, S, Dh), lambda b: (b, 0, 0, 0))
    return pl.pallas_call(
        functools.partial(_attention_kernel, scale=scale),
        out_shape=jax.ShapeDtypeStruct((B, H, S, Dh), q.dtype),
        grid=(B,),
        in_specs=[
            qkv_spec,
            pl.BlockSpec((None, H, S, Dh), lambda b: (b, 0, 0, 0)),
            pl.BlockSpec((None, H, S, Dh), lambda b: (b, 0, 0, 0)),
            pl.BlockSpec((None, 1, S), lambda b: (b, 0, 0)),
        ],
        out_specs=pl.BlockSpec((None, H, S, Dh), lambda b: (b, 0, 0, 0)),
        compiler_params=pltpu.CompilerParams(dimension_semantics=("parallel",)),
    )(q, k, v, addmask)


def _decoder_kernel(x_ref, w_ref, b_ref, o_ref):
    # Fused LinearDecoder: log_softmax(x @ w + b, axis=-1).
    # Pad columns carry bias=-1e30, so exp underflows to 0 and the normalizer
    # matches the unpadded slot vocabulary.
    logits = jnp.dot(x_ref[...], w_ref[...], preferred_element_type=jnp.float32)
    logits = logits + b_ref[...].astype(jnp.float32)
    m = jnp.max(logits, axis=-1, keepdims=True)
    z = logits - m
    lse = jnp.log(jnp.sum(jnp.exp(z), axis=-1, keepdims=True))
    o_ref[...] = (z - lse).astype(o_ref.dtype)


def pallas_linear_log_softmax(x2d, w, b):
    M, K = x2d.shape
    N = w.shape[1]          # lane-dense padded slot vocab (multiple of 128)
    tm = _row_tile(M)
    return pl.pallas_call(
        _decoder_kernel,
        out_shape=jax.ShapeDtypeStruct((M, N), x2d.dtype),
        grid=(M // tm,),
        in_specs=[
            pl.BlockSpec((tm, K), lambda i: (i, 0)),
            pl.BlockSpec((K, N), lambda i: (0, 0)),
            pl.BlockSpec((1, N), lambda i: (0, 0)),
        ],
        out_specs=pl.BlockSpec((tm, N), lambda i: (i, 0)),
        compiler_params=pltpu.CompilerParams(dimension_semantics=("parallel",)),
    )(x2d, w, b.reshape(1, N))


# ------------------------------ model glue ---------------------------------

def init_params(key, *, vocab, max_pos, d, layers, ffn, slot_vocab):
    keys = jax.random.split(key, 4 + layers)

    def nrm(k, shape):
        return (0.02 * jax.random.normal(k, shape)).astype(jnp.float32)

    # Decoder weight/bias padded to a lane-dense multiple of 128 columns; pad
    # bias is -1e30 so it never perturbs the log_softmax normalizer.
    n_pad = max(128, -(-slot_vocab // 128) * 128)
    dec_w = jnp.zeros((d, n_pad), jnp.float32).at[:, :slot_vocab].set(
        nrm(keys[3], (d, slot_vocab)))
    dec_b = jnp.full((n_pad,), -1e30, jnp.float32).at[:slot_vocab].set(0.0)

    p = {
        "tok_emb": nrm(keys[0], (vocab, d)),
        "pos_emb": nrm(keys[1], (max_pos, d)),
        "type_emb": nrm(keys[2], (2, d)),
        "emb_ln_g": jnp.ones((d,), jnp.float32),
        "emb_ln_b": jnp.zeros((d,), jnp.float32),
        "dec_w": dec_w,
        "dec_b": dec_b,
        "slot_vocab": slot_vocab,
        "layers": [],
    }
    for li in range(layers):
        lk = jax.random.split(keys[4 + li], 6)
        # Q/K/V linears fused into a single [d, 3d] projection.
        wqkv = jnp.concatenate([nrm(lk[0], (d, d)), nrm(lk[1], (d, d)),
                                nrm(lk[2], (d, d))], axis=1)
        p["layers"].append({
            "wqkv": wqkv, "bqkv": jnp.zeros((3 * d,), jnp.float32),
            "wo": nrm(lk[3], (d, d)), "bo": jnp.zeros((d,), jnp.float32),
            "ln1_g": jnp.ones((d,), jnp.float32), "ln1_b": jnp.zeros((d,), jnp.float32),
            "w1": nrm(lk[4], (d, ffn)), "b1": jnp.zeros((ffn,), jnp.float32),
            "w2": nrm(lk[5], (ffn, d)), "b2": jnp.zeros((d,), jnp.float32),
            "ln2_g": jnp.ones((d,), jnp.float32), "ln2_b": jnp.zeros((d,), jnp.float32),
        })
    return p


def bert_encoder(params, piece_tensor, piece_mask, *, heads):
    """BertEncoder.forward: BERT hidden states (eval-mode dropout = identity)."""
    B, S = piece_tensor.shape
    D = params["tok_emb"].shape[1]
    Dh = D // heads

    emb = (params["tok_emb"][piece_tensor]
           + params["pos_emb"][:S][None, :, :]
           + params["type_emb"][0][None, None, :])
    h2 = pallas_layernorm(emb.reshape(B * S, D),
                          params["emb_ln_g"], params["emb_ln_b"])   # [B*S, D]

    # HuggingFace-style extended additive attention mask: (1-mask)*-10000
    addmask = ((1.0 - piece_mask.astype(jnp.float32)) * -10000.0)[:, None, :]  # [B,1,S]

    for lp in params["layers"]:
        x2 = h2
        # Fused QKV projection: one matmul instead of three.
        qkv = pallas_linear(x2, lp["wqkv"], lp["bqkv"])              # [B*S, 3D]
        qkv = qkv.reshape(B, S, 3, heads, Dh).transpose(2, 0, 3, 1, 4)  # [3,B,H,S,Dh]
        q, k, v = qkv[0], qkv[1], qkv[2]

        ctx = pallas_attention(q, k, v, addmask)                     # [B,H,S,Dh]
        ctx = ctx.transpose(0, 2, 1, 3).reshape(B * S, D)

        # Output projection + residual + LayerNorm fused into one kernel.
        h1 = pallas_linear_res_ln(ctx, lp["wo"], lp["bo"], x2,
                                  lp["ln1_g"], lp["ln1_b"])
        ffn_h = pallas_linear(h1, lp["w1"], lp["b1"], act="gelu")
        # FFN down-projection + residual + LayerNorm fused as well.
        h2 = pallas_linear_res_ln(ffn_h, lp["w2"], lp["b2"], h1,
                                  lp["ln2_g"], lp["ln2_b"])

    # TODO(synk): nn.Dropout omitted (eval-mode identity).
    return h2.reshape(B, S, D)


def bert_recognizer_forward(params, piece_tensor, piece_mask, span_list, *, heads):
    """BertRecognizer.forward."""
    hidden = bert_encoder(params, piece_tensor, piece_mask, heads=heads)   # [B,S,D]
    B, S, D = hidden.shape

    # Piece2Word._first: take hidden[sent_i, span_start+1, :] for each span.
    len_list = [len(spans) for spans in span_list]
    max_len = max(len_list)
    rows = []
    for sent_i, spans in enumerate(span_list):
        vecs = [hidden[sent_i, span[0] + 1, :] for span in spans]
        vecs += [jnp.zeros((D,), hidden.dtype)] * (max_len - len(spans))   # zero pad_sign
        rows.append(jnp.stack(vecs, axis=0))
    padded = jnp.stack(rows, axis=0)                                       # [B, max_len, D]

    # LinearDecoder: log_softmax(linear(padded), dim=-1), fused Pallas kernel
    # over a lane-dense padded column dimension; padded columns sliced off.
    slot_vocab = params["slot_vocab"]
    slot = pallas_linear_log_softmax(
        padded.reshape(B * max_len, D), params["dec_w"], params["dec_b"]
    ).reshape(B, max_len, -1)[:, :, :slot_vocab]

    # Drop padded positions and concat across sentences.
    return jnp.concatenate([slot[i, :len_list[i], :] for i in range(B)], axis=0)


# --------------------------------- main -------------------------------------

if __name__ == "__main__":
    # Small, structurally faithful config (scaled-down BERT).
    VOCAB, MAX_POS, D, LAYERS, HEADS, FFN, SLOT_VOCAB = 50, 32, 64, 2, 2, 128, 8
    B, S = 2, 16

    params = init_params(jax.random.PRNGKey(0), vocab=VOCAB, max_pos=MAX_POS, d=D,
                         layers=LAYERS, ffn=FFN, slot_vocab=SLOT_VOCAB)

    k_tok, _ = jax.random.split(jax.random.PRNGKey(0))
    piece_tensor = jax.random.randint(k_tok, (B, S), 0, VOCAB)          # LongTensor analogue
    piece_mask = jnp.ones((B, S), jnp.int32).at[1, 12:].set(0)          # attention mask
    span_list = [[(0, 2), (2, 5), (5, 7)], [(0, 1), (1, 3)]]            # python span lists

    out = bert_recognizer_forward(params, piece_tensor, piece_mask, span_list, heads=HEADS)
    jax.block_until_ready(out)
    assert out.shape == (sum(len(s) for s in span_list), SLOT_VOCAB)
    print("KERNEL_OK")
</pallas_src>

<mosaic_0001>
module attributes {stable_mosaic.version = 11 : i64} {
  func.func @_layernorm_kernel(%arg0: i32, %arg1: memref<32x64xf32, #tpu.memory_space<vmem>>, %arg2: memref<1x64xf32, #tpu.memory_space<vmem>>, %arg3: memref<1x64xf32, #tpu.memory_space<vmem>>, %arg4: memref<32x64xf32, #tpu.memory_space<vmem>>) attributes {dimension_semantics = [#tpu.dimension_semantics<parallel>], iteration_bounds = array<i64: 1>, scalar_prefetch = 0 : i64, scratch_operands = 0 : i64, tpu.core_type = #tpu.core_type<tc>, window_params = [{transform_indices = @transform_0, window_bounds = array<i64: 32, 64>}, {pipeline_mode = #tpu.pipeline_mode<synchronous>, transform_indices = @transform_1, window_bounds = array<i64: 1, 64>}, {pipeline_mode = #tpu.pipeline_mode<synchronous>, transform_indices = @transform_2, window_bounds = array<i64: 1, 64>}, {transform_indices = @transform_3, window_bounds = array<i64: 32, 64>}]} {
    %c0 = arith.constant 0 : index
    %c0_0 = arith.constant 0 : index
    %0 = vector.load %arg1[%c0, %c0_0] : memref<32x64xf32, #tpu.memory_space<vmem>>, vector<32x64xf32>
    %cst = arith.constant dense<0.000000e+00> : vector<32xf32>
    %1 = vector.multi_reduction <add>, %0, %cst [1] : vector<32x64xf32> to vector<32xf32>
    %2 = vector.shape_cast %1 : vector<32xf32> to vector<32x1xf32>
    %cst_1 = arith.constant 6.400000e+01 : f32
    %3 = vector.broadcast %cst_1 : f32 to vector<32x1xf32>
    %4 = arith.divf %2, %3 : vector<32x1xf32>
    %5 = vector.broadcast %4 : vector<32x1xf32> to vector<32x64xf32>
    %6 = arith.subf %0, %5 : vector<32x64xf32>
    %7 = arith.mulf %6, %6 : vector<32x64xf32>
    %cst_2 = arith.constant dense<0.000000e+00> : vector<32xf32>
    %8 = vector.multi_reduction <add>, %7, %cst_2 [1] : vector<32x64xf32> to vector<32xf32>
    %9 = vector.shape_cast %8 : vector<32xf32> to vector<32x1xf32>
    %cst_3 = arith.constant 6.400000e+01 : f32
    %10 = vector.broadcast %cst_3 : f32 to vector<32x1xf32>
    %11 = arith.divf %9, %10 : vector<32x1xf32>
    %12 = vector.broadcast %4 : vector<32x1xf32> to vector<32x64xf32>
    %13 = arith.subf %0, %12 : vector<32x64xf32>
    %cst_4 = arith.constant 9.99999996E-13 : f32
    %14 = vector.broadcast %cst_4 : f32 to vector<32x1xf32>
    %15 = arith.addf %11, %14 : vector<32x1xf32>
    %16 = math.rsqrt %15 : vector<32x1xf32>
    %17 = vector.broadcast %16 : vector<32x1xf32> to vector<32x64xf32>
    %18 = arith.mulf %13, %17 : vector<32x64xf32>
    %c0_5 = arith.constant 0 : index
    %c0_6 = arith.constant 0 : index
    %19 = vector.load %arg2[%c0_5, %c0_6] : memref<1x64xf32, #tpu.memory_space<vmem>>, vector<1x64xf32>
    %20 = vector.broadcast %19 : vector<1x64xf32> to vector<32x64xf32>
    %21 = arith.mulf %18, %20 : vector<32x64xf32>
    %c0_7 = arith.constant 0 : index
    %c0_8 = arith.constant 0 : index
    %22 = vector.load %arg3[%c0_7, %c0_8] : memref<1x64xf32, #tpu.memory_space<vmem>>, vector<1x64xf32>
    %23 = vector.broadcast %22 : vector<1x64xf32> to vector<32x64xf32>
    %24 = arith.addf %21, %23 : vector<32x64xf32>
    %c0_9 = arith.constant 0 : index
    %c0_10 = arith.constant 0 : index
    %25 = vector.load %arg4[%c0_9, %c0_10] : memref<32x64xf32, #tpu.memory_space<vmem>>, vector<32x64xf32>
    tpu.vector_store %arg4[%c0_9, %c0_10], %24 {strides = array<i32>} : memref<32x64xf32, #tpu.memory_space<vmem>>, vector<32x64xf32>,
    return
  }
  func.func @transform_0(%arg0: i32) -> (i32, i32) {
    %c0_i32 = arith.constant 0 : i32
    %c0_i32_0 = arith.constant 0 : i32
    return %arg0, %c0_i32 : i32, i32
  }
  func.func @transform_1(%arg0: i32) -> (i32, i32) {
    %c0_i32 = arith.constant 0 : i32
    %c0_i32_0 = arith.constant 0 : i32
    %c0_i32_1 = arith.constant 0 : i32
    return %c0_i32, %c0_i32_0 : i32, i32
  }
  func.func @transform_2(%arg0: i32) -> (i32, i32) {
    %c0_i32 = arith.constant 0 : i32
    %c0_i32_0 = arith.constant 0 : i32
    %c0_i32_1 = arith.constant 0 : i32
    return %c0_i32, %c0_i32_0 : i32, i32
  }
  func.func @transform_3(%arg0: i32) -> (i32, i32) {
    %c0_i32 = arith.constant 0 : i32
    %c0_i32_0 = arith.constant 0 : i32
    return %arg0, %c0_i32 : i32, i32
  }
}

</mosaic_0001>

<bundles_post_ra>
// kernel: tpu_custom_call.1
= control target key start
LH: loop header
LB: loop body
LE: loop exit
PB: predicated region body
PF: predicated region fallthrough
CT: control target
= control target key end

     0   :  { %8 = vsyncpa [#allocation3], 0  ;;  %s264_s0 = inlined_call_operand.hbm [shape: f32[32,64], index: 0, kind: input, shape index: {}]   ;;  %s265_s1 = inlined_call_operand.vmem [shape: f32[1,64], index: 1, kind: input, shape index: {}]   ;;  %s266_s2 = inlined_call_operand.vmem [shape: f32[1,64], index: 2, kind: input, shape index: {}]   ;;  %s267_s3 = inlined_call_operand.hbm [shape: f32[32,64], index: 3, kind: output, shape index: {}]  }
   0x1   :  { %9 = vsyncpa [#allocation4], 0  ;;  %s192_s12 = smov [#allocation2]   ;;  %s144_s16 = scalar_lea.hbm %s264_s0, 512 }
   0x2   :  { %s15_s13 = sshll.u32 %s192_s12, 4  ;;  %p145_p0 = scmp.ne.s32.totalorder %s264_s0, %s144_s16  ;;  %s16_s13 = int_to_ptr.vmem [resolvable:$true] %s15_s13 }
   0x3   :  { %p148_p1 = scmp.lt.u32.totalorder %s144_s16, %s264_s0 }
   0x5   :  { %p150_p2 = pnand %p148_p1, %p145_p0 }
   0x7   :  { %153 = shalt.err (!%p150_p2)
}
   0x8   :  { %s154_s21 = scalar_lea.vmem %s16_s13, 512  ;;  %p159_p4 = scmp.lt.s32.totalorder %s16_s13, %s16_s13 }
   0x9   :  { %p155_p3 = scmp.ne.s32.totalorder %s16_s13, %s154_s21  ;;  %p160_p5 = scmp.lt.s32.totalorder %s154_s21, %s154_s21 }
   0xb   :  { %p161_p6 = por %p160_p5, %p159_p4 }
   0xd   :  { %p162_p7 = pnand %p161_p6, %p155_p3 }
   0xf   :  { %165 = shalt.err (!%p162_p7)
}
  0x10   :  { %s193_s22 = smov 128   ;;  %s194_s23 = smov 8  }
  0x11   :  { %21 = dma.hbm_to_vmem [thread:$0]  %s264_s0, 512, %s16_s13, [#allocation3], %s193_s22, %s193_s22, %s194_s23  }
  0x12   :  { %188 = dma.done.wait [#allocation3], 512  }
  0x13   :  { %189 = vsyncadd [#allocation3], 4294966784  ;;  %vm33_vm0 = vcmask 523264   ;;  %v29_v0 = vld [vmem:[#allocation2] sm:$0xff]  ;;  %v31_v1 = vld [vmem:[#allocation2 + $0x10] sm:$0xff] }
  0x14   :  { %v30_v2 = vld [vmem:[#allocation2 + $0x8] sm:$0xff]  ;;  %v34_v3 = vsel %vm33_vm0, %v29_v0, 0.0  ;;  %v40_v4 = vsel %vm33_vm0, %v31_v1, 0.0  ;;  %v32_v5 = vld [vmem:[#allocation2 + $0x18] sm:$0xff]  ;;  %v130_v41 = vld [vmem:[%s265_s1] ss:$0 sm:$0xff] }
  0x15   :  { %35 = vadd.xlane.f32.xlu0 %v34_v3  ;;  %41 = vadd.xlane.f32.xlu1 %v40_v4  ;;  %v37_v6 = vsel %vm33_vm0, %v30_v2, 0.0  ;;  %v43_v7 = vsel %vm33_vm0, %v32_v5, 0.0  ;;  %v131_v43 = vld [vmem:[%s266_s2] ss:$0 sm:$0xff]  ;;  %s195_s1 = smov [#allocation5]  }
  0x16   :  { %s118_s29 = sshll.u32 %s195_s1, 4  ;;  %s119_s29 = int_to_ptr.vmem [resolvable:$true] %s118_s29 }
  0x17   :  { %s166_s2 = scalar_lea.vmem %s119_s29, 512  ;;  %p171_p9 = scmp.lt.s32.totalorder %s119_s29, %s119_s29 }
  0x18   :  { %p167_p8 = scmp.ne.s32.totalorder %s119_s29, %s166_s2  ;;  %p172_p10 = scmp.lt.s32.totalorder %s166_s2, %s166_s2 }
  0x19   :  { %38 = vadd.xlane.f32.xlu0 %v37_v6  ;;  %44 = vadd.xlane.f32.xlu1 %v43_v7 }
  0x1a   :  { %p173_p11 = por %p172_p10, %p171_p9 }
  0x1c   :  { %p174_p12 = pnand %p173_p11, %p167_p8 }
  0xa2   :  { %v36_v8 = vpop.xlane.xlu0 %35  ;;  %v42_v9 = vpop.xlane.xlu1 %41 }
  0xa3   :  { %v47_v10 = vmul.f32 0.015625, %v36_v8  ;;  %v49_v11 = vmul.f32 0.015625, %v42_v9 }
  0xa5   :  { %v51_v12 = vsub.f32 %v29_v0, %v47_v10  ;;  %v53_v13 = vsub.f32 %v31_v1, %v49_v11 }
  0xa6   :  { %v39_v14 = vpop.xlane.xlu0 %38  ;;  %v45_v15 = vpop.xlane.xlu1 %44 }
  0xa7   :  { %v48_v16 = vmul.f32 0.015625, %v39_v14  ;;  %v50_v17 = vmul.f32 0.015625, %v45_v15  ;;  %v55_v18 = vmul.f32 %v51_v12, %v51_v12  ;;  %v57_v19 = vmul.f32 %v53_v13, %v53_v13 }
  0xa9   :  { %v52_v20 = vsub.f32 %v30_v2, %v48_v16  ;;  %v54_v21 = vsub.f32 %v32_v5, %v50_v17  ;;  %v59_v22 = vsel %vm33_vm0, %v55_v18, 0.0  ;;  %v65_v23 = vsel %vm33_vm0, %v57_v19, 0.0 }
  0xaa   :  { %60 = vadd.xlane.f32.xlu0 %v59_v22 }
  0xab   :  { %v56_v24 = vmul.f32 %v52_v20, %v52_v20  ;;  %v58_v25 = vmul.f32 %v54_v21, %v54_v21 }
  0xad   :  { %v62_v26 = vsel %vm33_vm0, %v56_v24, 0.0  ;;  %v68_v27 = vsel %vm33_vm0, %v58_v25, 0.0 }
  0xae   :  { %66 = vadd.xlane.f32.xlu0 %v65_v23  ;;  %63 = vadd.xlane.f32.xlu1 %v62_v26 }
  0xb2   :  { %69 = vadd.xlane.f32.xlu1 %v68_v27 }
 0x137   :  { %v61_v28 = vpop.xlane.xlu0 %60 }
 0x138   :  { %v71_v29 = vmul.f32 0.015625, %v61_v28 }
 0x13a   :  { %v75_v30 = vadd.f32 1e-12, %v71_v29 }
 0x13b   :  { %v64_v31 = vpop.xlane.xlu1 %63  ;;  %v67_v32 = vpop.xlane.xlu0 %66 }
 0x13c   :  { %136 = vrsqrt.f32 %v75_v30  ;;  %v72_v33 = vmul.f32 0.015625, %v64_v31  ;;  %v73_v34 = vmul.f32 0.015625, %v67_v32 }
 0x13e   :  { %v76_v35 = vadd.f32 1e-12, %v72_v33  ;;  %v77_v36 = vadd.f32 1e-12, %v73_v34 }
 0x13f   :  { %v70_v37 = vpop.xlane.xlu1 %69 }
 0x140   :  { %138 = vrsqrt.f32 %v76_v35  ;;  %v74_v38 = vmul.f32 0.015625, %v70_v37 }
 0x141   :  { %140 = vrsqrt.f32 %v77_v36 }
 0x142   :  { %v78_v39 = vadd.f32 1e-12, %v74_v38 }
 0x144   :  { %142 = vrsqrt.f32 %v78_v39 }
 0x146   :  { %v137_v40 = vpop.eup %136 }
 0x147   :  { %v83_v42 = vmul.f32 %v137_v40, %v51_v12 }
 0x149   :  { %v94_v44 = vmul.f32 %v130_v41, %v83_v42 }
 0x14a   :  { %v139_v45 = vpop.eup %138 }
 0x14b   :  { %v141_v46 = vpop.eup %140  ;;  %v84_v47 = vmul.f32 %v139_v45, %v52_v20  ;;  %v105_v48 = vadd.f32 %v131_v43, %v94_v44 }
 0x14c   :  { %v85_v49 = vmul.f32 %v141_v46, %v53_v13 }
 0x14d   :  { %v95_v50 = vmul.f32 %v130_v41, %v84_v47  ;;  %109 = vst.msk [vmem:[#allocation5] sm:$0xff] %vm33_vm0, %v105_v48 }
 0x14e   :  { %v143_v51 = vpop.eup %142  ;;  %v96_v52 = vmul.f32 %v130_v41, %v85_v49 }
 0x14f   :  { %v86_v53 = vmul.f32 %v143_v51, %v54_v21  ;;  %v106_v54 = vadd.f32 %v131_v43, %v95_v50 }
 0x150   :  { %v107_v55 = vadd.f32 %v131_v43, %v96_v52 }
 0x151   :  { %v97_v56 = vmul.f32 %v130_v41, %v86_v53  ;;  %110 = vst.msk [vmem:[#allocation5 + $0x8] sm:$0xff] %vm33_vm0, %v106_v54 }
 0x152   :  { %111 = vst.msk [vmem:[#allocation5 + $0x10] sm:$0xff] %vm33_vm0, %v107_v55 }
 0x153   :  { %v108_v57 = vadd.f32 %v131_v43, %v97_v56 }
 0x155   :  { %112 = vst.msk [vmem:[#allocation5 + $0x18] sm:$0xff] %vm33_vm0, %v108_v57 }
 0x156   :  { %177 = shalt.err (!%p174_p12)
}
 0x157   :  { %s178_s5 = scalar_lea.hbm %s267_s3, 512 }
 0x158   :  { %p179_p13 = scmp.ne.s32.totalorder %s267_s3, %s178_s5  ;;  %p182_p0 = scmp.lt.u32.totalorder %s178_s5, %s267_s3 }
 0x15a   :  { %p184_p1 = pnand %p182_p0, %p179_p13 }
 0x15c   :  { %187 = shalt.err (!%p184_p1)
}
 0x15d   :  { %124 = dma.vmem_to_hbm [thread:$0]  %s119_s29, 512, %s267_s3, [#allocation4], %s193_s22, %s193_s22, %s194_s23  }
 0x15e   :  { %190 = dma.done.wait [#allocation4], 512  }
 0x15f   :  { %191 = vsyncadd [#allocation4], 4294966784 }
 0x160   :  { %128 = vsyncpa [#allocation3], 1 }
 0x161   :  { %129 = vsyncpa [#allocation4], 1 }

</bundles_post_ra>
